<compile_context>
chip_gen: v7x
topology: tpu7x:2x2x1
jax: 0.10.0
libtpu: 0.0.40
codegen_flags: <defaults>
</compile_context>

<pallas_src>
import functools

import jax
import jax.numpy as jnp
import numpy as np
from jax.experimental import pallas as pl
from jax.experimental.pallas import tpu as pltpu


def _round_up(x, m):
    return ((x + m - 1) // m) * m


def _scale_col(nf_col):
    # torch neg(): negf2 = negf * -2 + 1 (per-row scalar, broadcast over N).
    return nf_col.astype(jnp.float32) * -2.0 + 1.0                  # (B,)


# ---------------------------------------------------------------------------
# Kernel 1: elementwise loss path (atypes 0, 1, 2), batch-tiled grid.
#   lefte  = [Godel min of] scale_i * cEmb_row_i
#   righte = [Godel max of] scale_j * cEmb_row_j
#   loss1  = -righte * relu(lefte - righte);  per-tile partial sums out.
# ---------------------------------------------------------------------------
def _elem_loss_kernel(*args, n_left, n_right):
    k = n_left + n_right
    x_refs = args[:k]
    sc_ref = args[k]
    out_ref = args[k + 1]

    sc = sc_ref[...]                                                  # (TB, k)
    vals = [sc[:, j:j + 1] * x_refs[j][...].astype(jnp.float32) for j in range(k)]
    lvals, rvals = vals[:n_left], vals[n_left:]
    lefte = lvals[0] if n_left == 1 else jnp.minimum(lvals[0], lvals[1])    # Godel t_norm
    righte = rvals[0] if n_right == 1 else jnp.maximum(rvals[0], rvals[1])  # Godel t_cnorm
    loss1 = -righte * jnp.maximum(lefte - righte, 0.0)
    tile_sum = jnp.sum(loss1)            # zero-padded rows contribute exactly 0
    out_ref[...] = jnp.reshape(tile_sum, (1, 1, 1))


def elem_loss(lefts, rights, l_scale_cols, r_scale_cols):
    B, N = lefts[0].shape
    xs = list(lefts) + list(rights)
    k = len(xs)
    sc = jnp.stack([c.astype(jnp.float32)
                    for c in (list(l_scale_cols) + list(r_scale_cols))], axis=1)  # (B, k)

    TB = min(1024, _round_up(B, 8))          # 512-1024 rows ~85% of HBM roofline
    B_pad = _round_up(B, TB)
    nb = B_pad // TB

    def pad_rows(x):
        return jnp.pad(x, ((0, B_pad - B), (0, 0))) if B_pad != B else x

    xs = [pad_rows(x) for x in xs]
    sc = pad_rows(sc)

    kern = functools.partial(_elem_loss_kernel, n_left=len(lefts),
                             n_right=len(rights))
    x_spec = pl.BlockSpec((TB, N), lambda i: (i, 0))
    s_spec = pl.BlockSpec((TB, k), lambda i: (i, 0))

    partials = pl.pallas_call(
        kern,
        out_shape=jax.ShapeDtypeStruct((nb, 1, 1), jnp.float32),
        grid=(nb,),
        in_specs=[x_spec] * k + [s_spec],
        out_specs=pl.BlockSpec((1, 1, 1), lambda i: (i, 0, 0)),
        compiler_params=pltpu.CompilerParams(
            dimension_semantics=("parallel",),          # v7x dual-TC split
            vmem_limit_bytes=32 * 1024 * 1024),
        cost_estimate=pl.CostEstimate(
            flops=8 * B_pad * N, transcendentals=0,
            bytes_accessed=4 * B_pad * (k * N + k) + 4 * nb),
    )(*xs, sc)
    return jnp.sum(partials) / jnp.float32(B)


# ---------------------------------------------------------------------------
# Kernel 2: role (bmm) loss path (atypes 3, 4, 5, 6).
# Grid = (batch tiles [parallel], role tiles [arbitrary]).  Per step, one wide
# MXU matmul of a (TM, N) batch tile against rt concatenated role matrices;
# rows are selected per role with a (TM, 1) id mask; empty (bt, t) tiles are
# skipped via scalar-prefetched occupancy counts.
#   expected_A[b, :] = B[b, :] @ R_{id[b]}
#   expected_B[b, :] = A[b, :] @ R_{id[b]}^T   (pre-transposed operand)
#   atypes 3/4: loss1 = -A * relu(expected_A - alpha) * relu(alpha - A)
#   atype  5  : loss1 = -B * relu(expected_B - alpha) * relu(alpha - B)
#   atype  6  : sum of both
# ---------------------------------------------------------------------------
def _bmm_loss_kernel(counts_ref, b_ref, a_ref, sc_ref, ids_ref, *rest,
                     alpha, use_A, use_B, rt, nt):
    idx = 0
    rA_ref = rest[idx] if use_A else None
    idx += int(use_A)
    rB_ref = rest[idx] if use_B else None
    idx += int(use_B)
    out_ref = rest[idx]
    acc_ref = rest[idx + 1]

    bt = pl.program_id(0)
    t = pl.program_id(1)

    @pl.when(t == 0)
    def _():
        acc_ref[...] = jnp.zeros_like(acc_ref)

    @pl.when(counts_ref[bt * nt + t] > 0)      # skip role tiles with no rows
    def _():
        relu = lambda x: jnp.maximum(x, 0.0)
        sc = sc_ref[...]                                              # (TM, 2)
        Bv = sc[:, 0:1] * b_ref[...].astype(jnp.float32)              # (TM, N)
        Av = sc[:, 1:2] * a_ref[...].astype(jnp.float32)              # (TM, N)
        ids = ids_ref[...]                                            # (TM, 1)
        n = Bv.shape[1]
        base = t * rt

        total = jnp.float32(0.0)
        if use_A:
            EA = jnp.dot(Bv, rA_ref[...].astype(jnp.float32),
                         preferred_element_type=jnp.float32)          # (TM, rt*N)
            GA = (-Av) * relu(alpha - Av)
            for r_local in range(rt):
                m = (ids == (base + r_local)).astype(jnp.float32)     # (TM, 1)
                Er = EA[:, r_local * n:(r_local + 1) * n]
                total = total + jnp.sum(m * (GA * relu(Er - alpha)))
        if use_B:
            EB = jnp.dot(Av, rB_ref[...].astype(jnp.float32),
                         preferred_element_type=jnp.float32)          # (TM, rt*N)
            GB = (-Bv) * relu(alpha - Bv)
            for r_local in range(rt):
                m = (ids == (base + r_local)).astype(jnp.float32)
                Er = EB[:, r_local * n:(r_local + 1) * n]
                total = total + jnp.sum(m * (GB * relu(Er - alpha)))
        acc_ref[...] += total

    @pl.when(t == nt - 1)
    def _():
        out_ref[...] = jnp.reshape(acc_ref[...], (1, 1, 1))


def bmm_loss(B_raw, A_raw, sB_col, sA_col, role_ids_sorted, rEmb, alpha,
             use_A, use_B):
    Bz, N = B_raw.shape
    roleSize = rEmb.shape[0]

    # Roles per grid step: >=2 fills the 256-wide MXU output at N=128; cap the
    # role block at ~2 MiB / buffer.  (If N is not lane-aligned, fall back to
    # one full-width role block so the block tiling stays legal.)
    rt = max(1, min(8, roleSize, (2 * 1024 * 1024) // (N * N * 4)))
    if N % 128 != 0:
        rt = roleSize
    role_pad = _round_up(roleSize, rt)
    nt = role_pad // rt

    # Batch tiling: leading "parallel" axis (v7x dual-TC split) and bounded
    # resident VMEM for large batches.
    TM = min(512, _round_up(Bz, 8))
    Bz_pad = _round_up(Bz, TM)
    nb = Bz_pad // TM
    pad_b = Bz_pad - Bz

    def pad_rows(x):
        return jnp.pad(x, ((0, pad_b), (0, 0))) if pad_b else x

    ids2 = role_ids_sorted.astype(jnp.int32).reshape(Bz, 1)
    if pad_b:
        ids2 = jnp.pad(ids2, ((0, pad_b), (0, 0)), constant_values=-1)  # never matches
    sc = pad_rows(jnp.stack([sB_col.astype(jnp.float32),
                             sA_col.astype(jnp.float32)], axis=1))       # (Bz_pad, 2)
    Bp = pad_rows(B_raw)
    Ap = pad_rows(A_raw)

    # Per-(batch-tile, role-tile) occupancy, scalar-prefetched for pl.when skip.
    tile_of = jnp.where(ids2[:, 0] >= 0, ids2[:, 0] // rt, -1).reshape(nb, TM)
    counts = jnp.sum(tile_of[:, :, None] == jnp.arange(nt)[None, None, :],
                     axis=1).reshape(-1).astype(jnp.int32)                # (nb*nt,)

    # One-off role layouts (done in XLA, lane-dense MXU operands):
    #   R_cat [:, r*N:(r+1)*N] = rEmb[r]      -> expected_A = Bv @ R_cat block
    #   RT_cat[:, r*N:(r+1)*N] = rEmb[r].T    -> expected_B = Av @ RT_cat block
    pad_r = role_pad - roleSize
    role_inputs, role_specs = [], []
    if use_A:
        Rc = jnp.transpose(rEmb, (1, 0, 2)).reshape(N, roleSize * N)
        if pad_r:
            Rc = jnp.pad(Rc, ((0, 0), (0, pad_r * N)))
        role_inputs.append(Rc)
        role_specs.append(pl.BlockSpec((N, rt * N), lambda bt, t, cnt: (0, t)))
    if use_B:
        RTc = jnp.transpose(rEmb, (2, 0, 1)).reshape(N, roleSize * N)
        if pad_r:
            RTc = jnp.pad(RTc, ((0, 0), (0, pad_r * N)))
        role_inputs.append(RTc)
        role_specs.append(pl.BlockSpec((N, rt * N), lambda bt, t, cnt: (0, t)))

    kern = functools.partial(_bmm_loss_kernel, alpha=float(alpha),
                             use_A=bool(use_A), use_B=bool(use_B),
                             rt=rt, nt=nt)
    nmm = int(use_A) + int(use_B)

    partials = pl.pallas_call(
        kern,
        out_shape=jax.ShapeDtypeStruct((nb, 1, 1), jnp.float32),
        grid_spec=pltpu.PrefetchScalarGridSpec(
            num_scalar_prefetch=1,
            grid=(nb, nt),
            in_specs=[
                pl.BlockSpec((TM, N), lambda bt, t, cnt: (bt, 0)),   # B rows
                pl.BlockSpec((TM, N), lambda bt, t, cnt: (bt, 0)),   # A rows
                pl.BlockSpec((TM, 2), lambda bt, t, cnt: (bt, 0)),   # neg scales
                pl.BlockSpec((TM, 1), lambda bt, t, cnt: (bt, 0)),   # role ids
            ] + role_specs,
            out_specs=pl.BlockSpec((1, 1, 1), lambda bt, t, cnt: (bt, 0, 0)),
            scratch_shapes=[pltpu.VMEM((1, 1), jnp.float32)],
        ),
        compiler_params=pltpu.CompilerParams(
            dimension_semantics=("parallel", "arbitrary"),
            vmem_limit_bytes=32 * 1024 * 1024),
        cost_estimate=pl.CostEstimate(
            flops=2 * nmm * nb * role_pad * TM * N * N,
            transcendentals=0,
            bytes_accessed=4 * (nmm * nb * role_pad * N * N
                                + Bz_pad * (2 * N + 3)) + 4 * nb),
    )(counts, Bp, Ap, sc, ids2, *role_inputs)

    return jnp.sum(partials) / jnp.float32(Bz)


# ---------------------------------------------------------------------------
# Wrapper reproducing the module's gather / neg / t_norm / t_cnorm (Godel)
# ---------------------------------------------------------------------------
def _bmm_case(cEmb, rEmb, b_idx, a_idx, role_ids, negf_b, negf_a, alpha,
              use_A, use_B):
    # Group rows by role id (sum over rows is order invariant).  The
    # permutation is folded into the gather indices, so no extra (B, N)
    # shuffle hits HBM; the sorted ids make the kernel's per-tile skip
    # effective (FLOPs ~independent of roleSize).
    role_ids = role_ids.astype(jnp.int32)
    order = jnp.argsort(role_ids)
    return bmm_loss(cEmb[b_idx[order]], cEmb[a_idx[order]],
                    _scale_col(negf_b[order]), _scale_col(negf_a[order]),
                    role_ids[order], rEmb, alpha, use_A=use_A, use_B=use_B)


def dfalc_forward(cEmb, rEmb, left, right, negf, atype, alpha):
    """Returns torch.mean(torch.sum(loss1, 1)) for logic_name='Godel'."""
    if atype == 0:
        return elem_loss([cEmb[left]], [cEmb[right]],
                         [_scale_col(-negf[:, 0])], [_scale_col(negf[:, 1])])
    if atype == 1:
        return elem_loss([cEmb[left[:, 0]], cEmb[left[:, 1]]], [cEmb[right]],
                         [_scale_col(negf[:, 0]), _scale_col(negf[:, 1])],
                         [_scale_col(negf[:, 2])])
    if atype == 2:
        return elem_loss([cEmb[left]], [cEmb[right[:, 0]], cEmb[right[:, 1]]],
                         [_scale_col(negf[:, 0])],
                         [_scale_col(negf[:, 1]), _scale_col(negf[:, 2])])
    if atype in (3, 4):
        return _bmm_case(cEmb, rEmb, b_idx=left, a_idx=right[:, 1],
                         role_ids=right[:, 0], negf_b=negf[:, 0],
                         negf_a=negf[:, 1], alpha=alpha,
                         use_A=True, use_B=False)
    if atype == 5:
        return _bmm_case(cEmb, rEmb, b_idx=right, a_idx=left[:, 1],
                         role_ids=left[:, 0], negf_b=negf[:, 1],
                         negf_a=negf[:, 0], alpha=alpha,
                         use_A=False, use_B=True)
    if atype == 6:
        return _bmm_case(cEmb, rEmb, b_idx=right, a_idx=left[:, 1],
                         role_ids=left[:, 0], negf_b=negf[:, 1],
                         negf_a=negf[:, 0], alpha=alpha,
                         use_A=True, use_B=True)
    raise ValueError(f"unknown atype {atype}")


# ---------------------------------------------------------------------------
# Pure-JAX reference (mirrors the torch code, exact f32 contractions)
# ---------------------------------------------------------------------------
def _neg(x, nf):
    return (nf[:, None] * -2.0 + 1.0) * x


def _ref_forward(cEmb, rEmb, left, right, negf, atype, alpha):
    relu = lambda x: jnp.maximum(x, 0.0)
    if atype == 0:
        lefte = _neg(cEmb[left], -negf[:, 0])
        righte = _neg(cEmb[right], negf[:, 1])
        loss1 = -righte * relu(lefte - righte)
    elif atype == 1:
        righte = _neg(cEmb[right], negf[:, 2])
        lefte = jnp.minimum(_neg(cEmb[left[:, 0]], negf[:, 0]),
                            _neg(cEmb[left[:, 1]], negf[:, 1]))
        loss1 = -righte * relu(lefte - righte)
    elif atype == 2:
        lefte = _neg(cEmb[left], negf[:, 0])
        righte = jnp.maximum(_neg(cEmb[right[:, 0]], negf[:, 1]),
                             _neg(cEmb[right[:, 1]], negf[:, 2]))
        loss1 = -righte * relu(lefte - righte)
    elif atype in (3, 4):
        B = _neg(cEmb[left], negf[:, 0])
        A = _neg(cEmb[right[:, 1]], negf[:, 1])
        R = rEmb[right[:, 0]]
        expected_A = jnp.sum(B[:, :, None] * R, axis=1)
        loss1 = -A * (relu(expected_A - alpha) * relu(alpha - A))
    elif atype == 5:
        B = _neg(cEmb[right], negf[:, 1])
        A = _neg(cEmb[left[:, 1]], negf[:, 0])
        R = rEmb[left[:, 0]]
        expected_B = jnp.sum(R * A[:, None, :], axis=2)
        loss1 = -B * (relu(expected_B - alpha) * relu(alpha - B))
    elif atype == 6:
        B = _neg(cEmb[right], negf[:, 1])
        A = _neg(cEmb[left[:, 1]], negf[:, 0])
        R = rEmb[left[:, 0]]
        expected_B = jnp.sum(R * A[:, None, :], axis=2)
        expected_A = jnp.sum(B[:, :, None] * R, axis=1)
        loss1 = (-B * (relu(expected_B - alpha) * relu(alpha - B))
                 + -A * (relu(expected_A - alpha) * relu(alpha - A)))
    else:
        raise ValueError(f"unknown atype {atype}")
    return jnp.mean(jnp.sum(loss1, axis=1))


if __name__ == "__main__":
    key = jax.random.PRNGKey(0)
    ks = jax.random.split(key, 8)

    conceptSize, roleSize, N, Bz = 16, 4, 128, 8
    alpha = 0.5

    cEmb = jax.random.uniform(ks[0], (conceptSize, N), jnp.float32)
    rEmb = jax.random.uniform(ks[1], (roleSize, N, N), jnp.float32)
    negf = jax.random.bernoulli(ks[2], 0.5, (Bz, 3)).astype(jnp.float32)

    c_a = jax.random.randint(ks[3], (Bz,), 0, conceptSize)
    c_b = jax.random.randint(ks[4], (Bz,), 0, conceptSize)
    c_c = jax.random.randint(ks[5], (Bz,), 0, conceptSize)
    r_a = jax.random.randint(ks[6], (Bz,), 0, roleSize)

    cases = [
        (0, c_a, c_b),                                    # concept subsumption
        (1, jnp.stack([c_a, c_c], axis=1), c_b),          # conjunction on the left
        (2, c_a, jnp.stack([c_b, c_c], axis=1)),          # disjunction on the right
        (3, c_a, jnp.stack([r_a, c_b], axis=1)),          # exists, expected_A term
        (5, jnp.stack([r_a, c_c], axis=1), c_b),          # exists, expected_B term
        (6, jnp.stack([r_a, c_c], axis=1), c_b),          # forall, both terms
    ]

    for atype, left, right in cases:
        out = dfalc_forward(cEmb, rEmb, left, right, negf, atype, alpha)
        out = jax.block_until_ready(out)
        ref = _ref_forward(cEmb, rEmb, left, right, negf, atype, alpha)
        if atype < 3:
            rtol, atol = 1e-5, 1e-5
        else:
            # MXU f32 matmul default precision vs. exact broadcast-sum reference.
            rtol, atol = 2e-3, 1e-2
        np.testing.assert_allclose(np.asarray(out), np.asarray(ref),
                                   rtol=rtol, atol=atol,
                                   err_msg=f"atype={atype}")

    print("KERNEL_OK")
</pallas_src>

<mosaic_0001>
module attributes {stable_mosaic.version = 11 : i64} {
  func.func @_elem_loss_kernel(%arg0: i32, %arg1: memref<8x128xf32, #tpu.memory_space<vmem>>, %arg2: memref<8x128xf32, #tpu.memory_space<vmem>>, %arg3: memref<8x2xf32, #tpu.memory_space<vmem>>, %arg4: memref<1x1x1xf32, #tpu.memory_space<vmem>>) attributes {dimension_semantics = [#tpu.dimension_semantics<parallel>], iteration_bounds = array<i64: 1>, scalar_prefetch = 0 : i64, scratch_operands = 0 : i64, tpu.core_type = #tpu.core_type<tc>, window_params = [{transform_indices = @transform_0, window_bounds = array<i64: 8, 128>}, {transform_indices = @transform_1, window_bounds = array<i64: 8, 128>}, {transform_indices = @transform_2, window_bounds = array<i64: 8, 2>}, {transform_indices = @transform_3, window_bounds = array<i64: 1, 1, 1>}]} {
    %c0 = arith.constant 0 : index
    %c0_0 = arith.constant 0 : index
    %0 = vector.load %arg3[%c0, %c0_0] : memref<8x2xf32, #tpu.memory_space<vmem>>, vector<8x2xf32>
    %1 = vector.extract_strided_slice %0 {offsets = [0, 0], sizes = [8, 1], strides = [1, 1]} : vector<8x2xf32> to vector<8x1xf32>
    %c0_1 = arith.constant 0 : index
    %c0_2 = arith.constant 0 : index
    %2 = vector.load %arg1[%c0_1, %c0_2] : memref<8x128xf32, #tpu.memory_space<vmem>>, vector<8x128xf32>
    %3 = vector.broadcast %1 : vector<8x1xf32> to vector<8x128xf32>
    %4 = arith.mulf %3, %2 : vector<8x128xf32>
    %5 = vector.extract_strided_slice %0 {offsets = [0, 1], sizes = [8, 1], strides = [1, 1]} : vector<8x2xf32> to vector<8x1xf32>
    %c0_3 = arith.constant 0 : index
    %c0_4 = arith.constant 0 : index
    %6 = vector.load %arg2[%c0_3, %c0_4] : memref<8x128xf32, #tpu.memory_space<vmem>>, vector<8x128xf32>
    %7 = vector.broadcast %5 : vector<8x1xf32> to vector<8x128xf32>
    %8 = arith.mulf %7, %6 : vector<8x128xf32>
    %cst = arith.constant 0.000000e+00 : f32
    %9 = vector.broadcast %cst : f32 to vector<8x128xf32>
    %10 = arith.subf %9, %8 : vector<8x128xf32>
    %11 = arith.subf %4, %8 : vector<8x128xf32>
    %cst_5 = arith.constant 0.000000e+00 : f32
    %12 = vector.broadcast %cst_5 : f32 to vector<8x128xf32>
    %13 = arith.maximumf %11, %12 : vector<8x128xf32>
    %14 = arith.mulf %10, %13 : vector<8x128xf32>
    %15 = vector.shape_cast %14 : vector<8x128xf32> to vector<1x8x128xf32>
    %cst_6 = arith.constant dense<0.000000e+00> : vector<1xf32>
    %16 = vector.multi_reduction <add>, %15, %cst_6 [1, 2] : vector<1x8x128xf32> to vector<1xf32>
    %17 = vector.shape_cast %16 : vector<1xf32> to vector<1x1x1xf32>
    %18 = vector.extract %17[0, 0, 0] : f32 from vector<1x1x1xf32>
    %19 = vector.broadcast %18 : f32 to vector<1x1x1xf32>
    %c0_7 = arith.constant 0 : index
    %c0_8 = arith.constant 0 : index
    %c0_9 = arith.constant 0 : index
    %20 = vector.load %arg4[%c0_7, %c0_8, %c0_9] : memref<1x1x1xf32, #tpu.memory_space<vmem>>, vector<1x1x1xf32>
    tpu.vector_store %arg4[%c0_7, %c0_8, %c0_9], %19 {strides = array<i32>} : memref<1x1x1xf32, #tpu.memory_space<vmem>>, vector<1x1x1xf32>,
    return
  }
  func.func @transform_0(%arg0: i32) -> (i32, i32) {
    %c0_i32 = arith.constant 0 : i32
    %c0_i32_0 = arith.constant 0 : i32
    return %arg0, %c0_i32 : i32, i32
  }
  func.func @transform_1(%arg0: i32) -> (i32, i32) {
    %c0_i32 = arith.constant 0 : i32
    %c0_i32_0 = arith.constant 0 : i32
    return %arg0, %c0_i32 : i32, i32
  }
  func.func @transform_2(%arg0: i32) -> (i32, i32) {
    %c0_i32 = arith.constant 0 : i32
    %c0_i32_0 = arith.constant 0 : i32
    return %arg0, %c0_i32 : i32, i32
  }
  func.func @transform_3(%arg0: i32) -> (i32, i32, i32) {
    %c0_i32 = arith.constant 0 : i32
    %c0_i32_0 = arith.constant 0 : i32
    %c0_i32_1 = arith.constant 0 : i32
    return %arg0, %c0_i32, %c0_i32_0 : i32, i32, i32
  }
}

</mosaic_0001>

<bundles_post_ra>
// kernel: tpu_custom_call.1
= control target key start
LH: loop header
LB: loop body
LE: loop exit
PB: predicated region body
PF: predicated region fallthrough
CT: control target
= control target key end

     0   :  { %8 = vsyncpa [#allocation3], 0  ;;  %s182_s0 = inlined_call_operand.vmem [shape: f32[8,128], index: 0, kind: input, shape index: {}]   ;;  %s183_s1 = inlined_call_operand.hbm [shape: f32[8,128], index: 1, kind: input, shape index: {}]   ;;  %s184_s2 = inlined_call_operand.vmem [shape: f32[8,2], index: 2, kind: input, shape index: {}]   ;;  %s185_s3 = inlined_call_operand.hbm [shape: f32[1,1,1], index: 3, kind: output, shape index: {}]  }
   0x1   :  { %9 = vsyncpa [#allocation4], 0  ;;  %s128_s12 = smov [#allocation2]   ;;  %s80_s16 = scalar_lea.hbm %s183_s1, 128 }
   0x2   :  { %s18_s13 = sshll.u32 %s128_s12, 4  ;;  %p81_p0 = scmp.ne.s32.totalorder %s183_s1, %s80_s16  ;;  %s19_s13 = int_to_ptr.vmem [resolvable:$true] %s18_s13 }
   0x3   :  { %p84_p1 = scmp.lt.u32.totalorder %s80_s16, %s183_s1 }
   0x5   :  { %p86_p2 = pnand %p84_p1, %p81_p0 }
   0x7   :  { %89 = shalt.err (!%p86_p2)
}
   0x8   :  { %s90_s21 = scalar_lea.vmem %s19_s13, 128  ;;  %p95_p4 = scmp.lt.s32.totalorder %s19_s13, %s19_s13 }
   0x9   :  { %p91_p3 = scmp.ne.s32.totalorder %s19_s13, %s90_s21  ;;  %p96_p5 = scmp.lt.s32.totalorder %s90_s21, %s90_s21 }
   0xb   :  { %p97_p6 = por %p96_p5, %p95_p4 }
   0xd   :  { %p98_p7 = pnand %p97_p6, %p91_p3 }
   0xf   :  { %101 = shalt.err (!%p98_p7)
}
  0x10   :  { %21 = dma.hbm_to_vmem [thread:$0]  %s183_s1, 128, %s19_s13, [#allocation3]  }
  0x11   :  { %124 = dma.done.wait [#allocation3], 128  }
  0x12   :  { %125 = vsyncadd [#allocation3], 4294967168  ;;  %v129_v0 = vmov 0   ;;  %v27_v1 = vld [vmem:[%s184_s2] sm:$0xff]  ;;  %v130_v2 = vmov 1   ;;  %s131_s1 = smov [#allocation5]  }
  0x13   :  { %78 = vset.pattern.permute.xlu0 %v129_v0  ;;  %v28_v4 = vld [vmem:[%s182_s0] sm:$0xff]  ;;  %s63_s2 = sshll.u32 %s131_s1, 4  ;;  %vm55_vm0 = vcmask 0   ;;  %s64_s2 = int_to_ptr.vmem [resolvable:$true] %s63_s2 }
  0x14   :  { %31 = vperm.xlu0 %78, %v27_v1   ;;  %v35_v5 = vld [vmem:[#allocation2] sm:$0xff]  ;;  %s102_s28 = scalar_lea.vmem %s64_s2, 16  ;;  %s106_s29 = scalar_lea.vmem %s64_s2, 32 }
  0x15   :  { %p103_p8 = scmp.ne.s32.totalorder %s64_s2, %s102_s28  ;;  %p107_p9 = scmp.lt.s32.totalorder %s64_s2, %s64_s2 }
  0x16   :  { %p108_p10 = scmp.lt.s32.totalorder %s106_s29, %s102_s28 }
  0x18   :  { %79 = vset.pattern.permute.xlu0 %v130_v2  ;;  %p109_p11 = por %p108_p10, %p107_p9 }
  0x19   :  { %37 = vperm.xlu0 %79, %v27_v1  }
  0x1a   :  { %p110_p12 = pnand %p109_p11, %p103_p8 }
  0x93   :  { %v32_v3 = vpop.permute.xlu0 %31 }
  0x94   :  { %v34_v7 = vmul.f32 %v32_v3, %v28_v4 }
  0x98   :  { %v38_v6 = vpop.permute.xlu0 %37 }
  0x99   :  { %v40_v8 = vmul.f32 %v38_v6, %v35_v5 }
  0x9b   :  { %v42_v9 = vsub.f32 %v34_v7, %v40_v8  ;;  %v41_v10 = vsub.f32 0.0, %v40_v8 }
  0x9d   :  { %v43_v11 = vmax.f32 %v42_v9, 0.0 }
  0x9f   :  { %v44_v12 = vmul.f32 %v43_v11, %v41_v10 }
  0xa1   :  { %45 = vadd.xlane.f32.xlu1 %v44_v12 }
 0x12e   :  { %v46_v13 = vpop.xlane.xlu1 %45 }
 0x12f   :  { %v47_v14 = vrot.slane %v46_v13, 4 }
 0x131   :  { %v48_v15 = vadd.f32 %v47_v14, %v46_v13 }
 0x133   :  { %v49_v16 = vrot.slane %v48_v15, 2 }
 0x135   :  { %v50_v17 = vadd.f32 %v49_v16, %v48_v15 }
 0x137   :  { %v51_v18 = vrot.slane %v50_v17, 1 }
 0x139   :  { %v52_v19 = vadd.f32 %v51_v18, %v50_v17 }
 0x13b   :  { %72 = vpush %v52_v19 }
 0x16c   :  { %s73_s0 = spop %72 }
 0x16d   :  { %v54_v20 = vstv %s73_s0 }
 0x16e   :  { %56 = vst.msk [vmem:[#allocation5] sm:$0x1] %vm55_vm0, %v54_v20 }
 0x16f   :  { %113 = shalt.err (!%p110_p12)
}
 0x170   :  { %s114_s5 = scalar_lea.hbm %s185_s3, 16 }
 0x171   :  { %p115_p13 = scmp.ne.s32.totalorder %s185_s3, %s114_s5  ;;  %p118_p0 = scmp.lt.u32.totalorder %s114_s5, %s185_s3 }
 0x173   :  { %p120_p1 = pnand %p118_p0, %p115_p13 }
 0x175   :  { %123 = shalt.err (!%p120_p1)
}
 0x176   :  { %66 = dma.vmem_to_hbm [thread:$0]  %s64_s2, 16, %s185_s3, [#allocation4]  }
 0x177   :  { %126 = dma.done.wait [#allocation4], 16  }
 0x178   :  { %127 = vsyncadd [#allocation4], 4294967280 }
 0x179   :  { %70 = vsyncpa [#allocation3], 1 }
 0x17a   :  { %71 = vsyncpa [#allocation4], 1 }

</bundles_post_ra>
